<compile_context>
chip_gen: v7x
topology: tpu7x:2x2x1
jax: 0.10.0
libtpu: 0.0.40
codegen_flags: <defaults>
</compile_context>

<pallas_src>
import functools

import jax
import jax.numpy as jnp
from jax.experimental import pallas as pl
from jax.experimental.pallas import tpu as pltpu


def _round_up(n, m):
    return ((n + m - 1) // m) * m


def _cdiv(a, b):
    return -(-a // b)


def _choose_row_tile(B, max_tm=256):
    """Row tile (multiple of 16 for bf16 sublane packing) with minimal batch pad.

    Prefers an even number of grid steps so the "parallel" row axis splits
    across both TensorCores on v7x; on single-TC chips (v5e/v6e) two small
    steps cost only ~0.35 us extra while avoiding large zero-row tiles.
    """
    b16 = _round_up(max(B, 1), 16)
    if b16 <= 16:
        return 16
    g = max(2, _cdiv(b16, max_tm))
    if g % 2:
        g += 1
    return _round_up(_cdiv(B, g), 16)


def classifier_kernel(x_ref, w1_ref, b1_ref, w2_ref, b2_ref, out_ref):
    """Fused bottleneck-linear -> fc-linear -> softmax(dim=-1) on one row tile."""
    # bottleneck: x @ W1 + b1  (bf16 MXU operands, f32 accumulation).
    h = jnp.dot(x_ref[...], w1_ref[...], preferred_element_type=jnp.float32)
    h = h + b1_ref[...]                                    # (tm, bottle) f32

    # fc: h @ W2 + b2. Padded W2 columns are zero and padded b2 lanes hold a
    # large-negative (finite) f32 sentinel, so padded logits vanish under
    # softmax.  Note: h is re-quantized to bf16 for the MXU, so the b1
    # contribution is carried at bf16 precision (covered by relaxed atol).
    logits = jnp.dot(h.astype(jnp.bfloat16), w2_ref[...],
                     preferred_element_type=jnp.float32)
    logits = logits + b2_ref[...]                          # (tm, n_pad) f32

    # Numerically stable softmax over the lane-dense (padded) class axis.
    # Kept in f32: v5e VPU/EUP have no bf16 path and 128 lanes of f32 is cheap.
    m = jnp.max(logits, axis=-1, keepdims=True)
    e = jnp.exp(logits - m)
    denom = jnp.sum(e, axis=-1, keepdims=True)
    r = pl.reciprocal(denom, approx=True)                  # EUP slot (free-ish)
    r = r * (2.0 - denom * r)                              # one Newton step
    out_ref[...] = (e * r).astype(out_ref.dtype)


def prepare_classifier_params(w1, b1, w2, b2, *, k_align=256, lane_align=128):
    """One-time repack of the weights into kernel layout.

    Call at init, NOT per forward: the repack reads/writes full weight copies
    in HBM, which would rival the kernel's own traffic if done every call.

      * bf16 MXU operands for W1/W2 (f32 accumulation happens in-kernel)
      * K axis (in_dim) zero-padded to a multiple of `k_align` -> unmasked
        lane loads / regular MXU cadence; zero rows contribute nothing
      * class axis zero-padded to a multiple of `lane_align` lanes for a
        lane-dense output; padded b2 lanes carry a finite large-negative
        f32 sentinel so softmax zeroes them
    """
    in_dim, bottle = w1.shape
    out_dim = w2.shape[1]
    in_pad = _round_up(in_dim, k_align)
    n_pad = _round_up(out_dim, lane_align)

    w1p = jnp.pad(w1.astype(jnp.bfloat16), ((0, in_pad - in_dim), (0, 0)))
    b1f = b1.astype(jnp.float32).reshape(1, bottle)
    w2p = jnp.pad(w2.astype(jnp.bfloat16), ((0, 0), (0, n_pad - out_dim)))
    neg_sentinel = float(jnp.finfo(jnp.float32).min) / 2   # finite in f32
    b2p = jnp.pad(b2.astype(jnp.float32).reshape(1, out_dim),
                  ((0, 0), (0, n_pad - out_dim)), constant_values=neg_sentinel)
    return w1p, b1f, w2p, b2p


def classifier_forward(x, w1p, b1f, w2p, b2p, *, out_dim, max_tm=256):
    """softmax((x @ W1 + b1) @ W2 + b2, axis=-1) with pre-packed weights."""
    B, in_dim = x.shape
    in_pad, bottle = w1p.shape
    n_pad = w2p.shape[1]

    tm = _choose_row_tile(B, max_tm)
    b_pad = _round_up(B, tm)

    # Per-call activation repack only: bf16 MXU operand, zero-pad rows to the
    # tile grid and K to the padded contraction dim (zeros contribute nothing).
    xp = jnp.pad(x.astype(jnp.bfloat16),
                 ((0, b_pad - B), (0, in_pad - in_dim)))

    # Grid-invariant operands: constant index_map + single buffer (no point
    # double-buffering blocks that never change; halves their VMEM footprint).
    wspec = dict(pipeline_mode=pl.Buffered(1))

    out = pl.pallas_call(
        classifier_kernel,
        # Emit directly in the caller dtype: halves writeback for bf16 callers
        # and drops the trailing astype/copy for f32 callers.
        out_shape=jax.ShapeDtypeStruct((b_pad, n_pad), x.dtype),
        grid_spec=pltpu.PrefetchScalarGridSpec(
            num_scalar_prefetch=0,
            grid=(b_pad // tm,),
            in_specs=[
                pl.BlockSpec((tm, in_pad), lambda i: (i, 0)),               # x rows
                pl.BlockSpec((in_pad, bottle), lambda i: (0, 0), **wspec),  # W1
                pl.BlockSpec((1, bottle), lambda i: (0, 0), **wspec),       # b1
                pl.BlockSpec((bottle, n_pad), lambda i: (0, 0), **wspec),   # W2
                pl.BlockSpec((1, n_pad), lambda i: (0, 0), **wspec),        # b2
            ],
            out_specs=pl.BlockSpec((tm, n_pad), lambda i: (i, 0)),
        ),
        # Row axis is embarrassingly parallel (megacore-shardable on v7x).
        # TODO(synk): for production-sized in_dim/bottleneck, add a K grid
        # axis ("arbitrary") with an f32 VMEM accumulator, or raise
        # vmem_limit_bytes, so full-width W1/W2 stay under the v7x 32 MiB
        # scoped-VMEM default.
        compiler_params=pltpu.CompilerParams(
            dimension_semantics=("parallel",)),
    )(xp, w1p, b1f, w2p, b2p)

    # Drop batch-pad rows and padded class lanes (no dtype cast needed).
    return out[:B, :out_dim]


def make_classifier(w1, b1, w2, b2, *, max_tm=256):
    """Pack weights once and return a jitted forward(x) closure."""
    out_dim = w2.shape[1]
    packed = prepare_classifier_params(w1, b1, w2, b2)
    fwd = jax.jit(functools.partial(classifier_forward,
                                    out_dim=out_dim, max_tm=max_tm))
    return lambda x: fwd(x, *packed)


def init_linear_params(key, fan_in, fan_out):
    """Deterministic init mimicking nn.Linear's U(-1/sqrt(fan_in), 1/sqrt(fan_in))."""
    kw, kb = jax.random.split(key)
    bound = 1.0 / jnp.sqrt(jnp.float32(fan_in))
    w = jax.random.uniform(kw, (fan_in, fan_out), jnp.float32, -bound, bound)
    b = jax.random.uniform(kb, (fan_out,), jnp.float32, -bound, bound)
    return w, b


if __name__ == "__main__":
    # Ragged batch (not a multiple of the row tile), in_dim not a multiple of
    # 128, and out_dim < 128 deliberately exercise every padding path.
    B, in_dim, bottle_neck_dim, out_dim = 300, 192, 256, 31

    key = jax.random.PRNGKey(0)
    kx, k1, k2 = jax.random.split(key, 3)

    x = jax.random.normal(kx, (B, in_dim), jnp.float32)
    w1, b1 = init_linear_params(k1, in_dim, bottle_neck_dim)
    w2, b2 = init_linear_params(k2, bottle_neck_dim, out_dim)

    # Weights are packed once here; the jitted forward only touches x.
    classifier = make_classifier(w1, b1, w2, b2)
    out = jax.block_until_ready(classifier(x))

    # Pure-JAX f32 reference (kernel uses bf16 MXU operands -> relaxed atol).
    ref = jax.nn.softmax((x @ w1 + b1) @ w2 + b2, axis=-1)
    assert out.shape == (B, out_dim)
    assert out.dtype == x.dtype
    assert jnp.allclose(out, ref, atol=5e-3), "mismatch vs reference"
    assert jnp.allclose(jnp.sum(out, axis=-1), 1.0, atol=1e-4), "softmax rows must sum to 1"

    print("KERNEL_OK")
</pallas_src>

<mosaic_0001>
module attributes {stable_mosaic.version = 11 : i64} {
  func.func @classifier_kernel(%arg0: i32, %arg1: memref<160x256xbf16, #tpu.memory_space<vmem>>, %arg2: memref<256x256xbf16, #tpu.memory_space<vmem>>, %arg3: memref<1x256xf32, #tpu.memory_space<vmem>>, %arg4: memref<256x128xbf16, #tpu.memory_space<vmem>>, %arg5: memref<1x128xf32, #tpu.memory_space<vmem>>, %arg6: memref<160x128xf32, #tpu.memory_space<vmem>>) attributes {dimension_semantics = [#tpu.dimension_semantics<parallel>], iteration_bounds = array<i64: 2>, scalar_prefetch = 0 : i64, scratch_operands = 0 : i64, tpu.core_type = #tpu.core_type<tc>, window_params = [{transform_indices = @transform_0, window_bounds = array<i64: 160, 256>}, {pipeline_mode = #tpu.pipeline_mode<synchronous>, transform_indices = @transform_1, window_bounds = array<i64: 256, 256>}, {pipeline_mode = #tpu.pipeline_mode<synchronous>, transform_indices = @transform_2, window_bounds = array<i64: 1, 256>}, {pipeline_mode = #tpu.pipeline_mode<synchronous>, transform_indices = @transform_3, window_bounds = array<i64: 256, 128>}, {pipeline_mode = #tpu.pipeline_mode<synchronous>, transform_indices = @transform_4, window_bounds = array<i64: 1, 128>}, {transform_indices = @transform_5, window_bounds = array<i64: 160, 128>}]} {
    %c0 = arith.constant 0 : index
    %c0_0 = arith.constant 0 : index
    %0 = vector.load %arg1[%c0, %c0_0] : memref<160x256xbf16, #tpu.memory_space<vmem>>, vector<160x256xbf16>
    %c0_1 = arith.constant 0 : index
    %c0_2 = arith.constant 0 : index
    %1 = vector.load %arg2[%c0_1, %c0_2] : memref<256x256xbf16, #tpu.memory_space<vmem>>, vector<256x256xbf16>
    %cst = arith.constant dense<0.000000e+00> : vector<160x256xf32>
    %2 = tpu.matmul %0, %1, %cst {dimension_numbers = #tpu.dot_dimension_numbers<[1], [0], [0], [1], [0, 0, 1, 1], [], []>} : vector<160x256xbf16>, vector<256x256xbf16>, vector<160x256xf32> -> vector<160x256xf32>
    %c0_3 = arith.constant 0 : index
    %c0_4 = arith.constant 0 : index
    %3 = vector.load %arg3[%c0_3, %c0_4] : memref<1x256xf32, #tpu.memory_space<vmem>>, vector<1x256xf32>
    %4 = vector.broadcast %3 : vector<1x256xf32> to vector<160x256xf32>
    %5 = arith.addf %2, %4 : vector<160x256xf32>
    %6 = arith.truncf %5 : vector<160x256xf32> to vector<160x256xbf16>
    %c0_5 = arith.constant 0 : index
    %c0_6 = arith.constant 0 : index
    %7 = vector.load %arg4[%c0_5, %c0_6] : memref<256x128xbf16, #tpu.memory_space<vmem>>, vector<256x128xbf16>
    %cst_7 = arith.constant dense<0.000000e+00> : vector<160x128xf32>
    %8 = tpu.matmul %6, %7, %cst_7 {dimension_numbers = #tpu.dot_dimension_numbers<[1], [0], [0], [1], [0, 0, 1, 1], [], []>} : vector<160x256xbf16>, vector<256x128xbf16>, vector<160x128xf32> -> vector<160x128xf32>
    %c0_8 = arith.constant 0 : index
    %c0_9 = arith.constant 0 : index
    %9 = vector.load %arg5[%c0_8, %c0_9] : memref<1x128xf32, #tpu.memory_space<vmem>>, vector<1x128xf32>
    %10 = vector.broadcast %9 : vector<1x128xf32> to vector<160x128xf32>
    %11 = arith.addf %8, %10 : vector<160x128xf32>
    %cst_10 = arith.constant dense<0xFF800000> : vector<160xf32>
    %12 = vector.multi_reduction <maximumf>, %11, %cst_10 [1] : vector<160x128xf32> to vector<160xf32>
    %13 = vector.shape_cast %12 : vector<160xf32> to vector<160x1xf32>
    %14 = vector.broadcast %13 : vector<160x1xf32> to vector<160x128xf32>
    %15 = arith.subf %11, %14 : vector<160x128xf32>
    %16 = math.exp %15 : vector<160x128xf32>
    %cst_11 = arith.constant dense<0.000000e+00> : vector<160xf32>
    %17 = vector.multi_reduction <add>, %16, %cst_11 [1] : vector<160x128xf32> to vector<160xf32>
    %18 = vector.shape_cast %17 : vector<160xf32> to vector<160x1xf32>
    %19 = tpu.reciprocal %18 {approx = true} : vector<160x1xf32> -> vector<160x1xf32>
    %20 = arith.mulf %18, %19 : vector<160x1xf32>
    %cst_12 = arith.constant 2.000000e+00 : f32
    %21 = vector.broadcast %cst_12 : f32 to vector<160x1xf32>
    %22 = arith.subf %21, %20 : vector<160x1xf32>
    %23 = arith.mulf %19, %22 : vector<160x1xf32>
    %24 = vector.broadcast %23 : vector<160x1xf32> to vector<160x128xf32>
    %25 = arith.mulf %16, %24 : vector<160x128xf32>
    %c0_13 = arith.constant 0 : index
    %c0_14 = arith.constant 0 : index
    %26 = vector.load %arg6[%c0_13, %c0_14] : memref<160x128xf32, #tpu.memory_space<vmem>>, vector<160x128xf32>
    tpu.vector_store %arg6[%c0_13, %c0_14], %25 {strides = array<i32>} : memref<160x128xf32, #tpu.memory_space<vmem>>, vector<160x128xf32>,
    return
  }
  func.func @transform_0(%arg0: i32) -> (i32, i32) {
    %c0_i32 = arith.constant 0 : i32
    %c0_i32_0 = arith.constant 0 : i32
    return %arg0, %c0_i32 : i32, i32
  }
  func.func @transform_1(%arg0: i32) -> (i32, i32) {
    %c0_i32 = arith.constant 0 : i32
    %c0_i32_0 = arith.constant 0 : i32
    %c0_i32_1 = arith.constant 0 : i32
    return %c0_i32, %c0_i32_0 : i32, i32
  }
  func.func @transform_2(%arg0: i32) -> (i32, i32) {
    %c0_i32 = arith.constant 0 : i32
    %c0_i32_0 = arith.constant 0 : i32
    %c0_i32_1 = arith.constant 0 : i32
    return %c0_i32, %c0_i32_0 : i32, i32
  }
  func.func @transform_3(%arg0: i32) -> (i32, i32) {
    %c0_i32 = arith.constant 0 : i32
    %c0_i32_0 = arith.constant 0 : i32
    %c0_i32_1 = arith.constant 0 : i32
    return %c0_i32, %c0_i32_0 : i32, i32
  }
  func.func @transform_4(%arg0: i32) -> (i32, i32) {
    %c0_i32 = arith.constant 0 : i32
    %c0_i32_0 = arith.constant 0 : i32
    %c0_i32_1 = arith.constant 0 : i32
    return %c0_i32, %c0_i32_0 : i32, i32
  }
  func.func @transform_5(%arg0: i32) -> (i32, i32) {
    %c0_i32 = arith.constant 0 : i32
    %c0_i32_0 = arith.constant 0 : i32
    return %arg0, %c0_i32 : i32, i32
  }
}

</mosaic_0001>

<bundles_post_ra>
// kernel: classifier_forward.1
= control target key start
LH: loop header
LB: loop body
LE: loop exit
PB: predicated region body
PF: predicated region fallthrough
CT: control target
= control target key end

     0   :  { %s1649_s18 = smov 0   ;;  %s2093_s0 = inlined_call_operand.vmem [shape: bf16[320,256], index: 0, kind: input, shape index: {}]   ;;  %s2094_s1 = inlined_call_operand.vmem [shape: bf16[256,256], index: 1, kind: input, shape index: {}]   ;;  %s2095_s2 = inlined_call_operand.vmem [shape: f32[1,256], index: 2, kind: input, shape index: {}]   ;;  %s2096_s3 = inlined_call_operand.vmem [shape: bf16[256,128], index: 3, kind: input, shape index: {}]   ;;  %s2097_s4 = inlined_call_operand.vmem [shape: f32[1,128], index: 4, kind: input, shape index: {}]   ;;  %s2098_s5 = inlined_call_operand.vmem [shape: f32[320,128], index: 5, kind: output, shape index: {}]  }
   0x1 LB: > { %s1273_s19 = sadd.s32 4294967295, %s1617_s18   ;;  %p1277_p0 = scmp.ge.s32.totalorder %s1617_s18, 1  ;;  %s1617_s18 = sphi %s1649_s18, %s15_s18  }
   0x2   : > { %p189_p1 = scmp.lt.s32.totalorder %s1617_s18, 3 }
   0x4   : > { %p190_p2 = pnand %p1277_p0, %p189_p1 }
   0x5   : > { %v1437_v0 = vld [vmem:[%s2094_s1 + $0x4] ss:$8 sps:$4 sm:$0xff] (!%p190_p2)   ;;  %v1439_v1 = vld [vmem:[%s2094_s1] ss:$8 sps:$4 sm:$0xff] (!%p190_p2)   ;;  %v1440_v2 = vld [vmem:[%s2094_s1 + $0x14] ss:$8 sps:$4 sm:$0xff] (!%p190_p2)  }
   0x6   : > { %193 = sbr.rel (%p190_p2) target bundleno = 900 (0x384), region = 40  ;;  %556 = vmatprep.subr.bf16.mxu0 (!%p190_p2), %v1437_v0  ;;  %v1442_v3 = vld [vmem:[%s2094_s1 + $0x10] ss:$8 sps:$4 sm:$0xff] (!%p190_p2)   ;;  %v1443_v4 = vld [vmem:[%s2094_s1 + $0x24] ss:$8 sps:$4 sm:$0xff] (!%p190_p2)  }
   0x7   : > { %557 = vmatpush1.bf16.msra.mxu0 (!%p190_p2), %v1439_v1  ;;  %s218_s30 = smul.u32 (!%p190_p2), 20, %s1273_s19  ;;  %v1445_v5 = vld [vmem:[%s2094_s1 + $0x20] ss:$8 sps:$4 sm:$0xff] (!%p190_p2)   ;;  %v1446_v6 = vld [vmem:[%s2094_s1 + $0x34] ss:$8 sps:$4 sm:$0xff] (!%p190_p2)  }
   0x8   : > { %558 = vmatprep.subr.bf16.mxu0 (!%p190_p2), %v1440_v2  ;;  %v1448_v7 = vld [vmem:[%s2094_s1 + $0x30] ss:$8 sps:$4 sm:$0xff] (!%p190_p2)   ;;  %v1449_v8 = vld [vmem:[%s2094_s1 + $0x44] ss:$8 sps:$4 sm:$0xff] (!%p190_p2)   ;;  %v1451_v9 = vld [vmem:[%s2094_s1 + $0x40] ss:$8 sps:$4 sm:$0xff] (!%p190_p2)  }
   0x9   : > { %p219_p3 = scmp.lt.s32.totalorder (!%p190_p2), %s218_s30, 39  ;;  %v1452_v10 = vld [vmem:[%s2094_s1 + $0x54] ss:$8 sps:$4 sm:$0xff] (!%p190_p2)   ;;  %v1454_v11 = vld [vmem:[%s2094_s1 + $0x50] ss:$8 sps:$4 sm:$0xff] (!%p190_p2)   ;;  %v1515_v22 = vld [vmem:[%s2096_s3 + $0x40] sm:$0xff] (!%p190_p2)  }
   0xa   : > { %v1455_v12 = vld [vmem:[%s2094_s1 + $0x64] ss:$8 sps:$4 sm:$0xff] (!%p190_p2)   ;;  %v1457_v14 = vld [vmem:[%s2094_s1 + $0x60] ss:$8 sps:$4 sm:$0xff] (!%p190_p2)   ;;  %v1458_v15 = vld [vmem:[%s2094_s1 + $0x74] ss:$8 sps:$4 sm:$0xff] (!%p190_p2)   ;;  %1353 = vmatprep.subr.bf16.mxu1 (!%p190_p2), %v1515_v22 }
   0xb   : > { %559 = vmatpush1.bf16.msra.mxu0 (!%p190_p2), %v1442_v3  ;;  %v1460_v16 = vld [vmem:[%s2094_s1 + $0x70] ss:$8 sps:$4 sm:$0xff] (!%p190_p2)   ;;  %v1461_v17 = vld [vmem:[%s2094_s1 + $0x84] ss:$8 sps:$4 sm:$0xff] (!%p190_p2)   ;;  %v1463_v18 = vld [vmem:[%s2094_s1 + $0x80] ss:$8 sps:$4 sm:$0xff] (!%p190_p2)  }
   0xc   : > { %560 = vmatprep.subr.bf16.mxu0 (!%p190_p2), %v1443_v4  ;;  %v1464_v19 = vld [vmem:[%s2094_s1 + $0x94] ss:$8 sps:$4 sm:$0xff] (!%p190_p2)   ;;  %v1466_v20 = vld [vmem:[%s2094_s1 + $0x90] ss:$8 sps:$4 sm:$0xff] (!%p190_p2)   ;;  %v1467_v21 = vld [vmem:[%s2094_s1 + $0xa4] ss:$8 sps:$4 sm:$0xff] (!%p190_p2)   ;;  %v286_v4 = vlaneseq (!%p190_p2) }
   0xd   : > { %s2100_s30 = smov (!%p219_p3, %s218_s30), 39  ;;  %v1516_v23 = vld [vmem:[%s2096_s3] sm:$0xff]   ;;  %v1517_v25 = vld [vmem:[%s2096_s3 + $0x48] sm:$0xff]   ;;  %v1519_v27 = vld [vmem:[%s2096_s3 + $0x50] sm:$0xff]  }
   0xe   : > { %s1352_s19 = sshll.u32 %s2100_s30, 3  ;;  %v1469_v24 = vld [vmem:[%s2094_s1 + $0xa0] ss:$8 sps:$4 sm:$0xff]   ;;  %1354 = vmatpush3.bf16.msra.mxu1 %v1516_v23  ;;  %v1470_v28 = vld [vmem:[%s2094_s1 + $0xb4] ss:$8 sps:$4 sm:$0xff]  }
   0xf   : > { %561 = vmatpush1.bf16.msra.mxu0 %v1445_v5  ;;  %s1701_s24 = scalar_lea.vmem %s2093_s0, %s1352_s19  ;;  %v1518_v26 = vld [vmem:[%s2096_s3 + $0x8] sm:$0xff]   ;;  %1355 = vmatprep.subr.bf16.mxu1 %v1517_v25  ;;  %v1472_v29 = vld [vmem:[%s2094_s1 + $0xb0] ss:$8 sps:$4 sm:$0xff]   ;;  %v1476_v34 = vld [vmem:[%s2094_s1 + $0xd4] ss:$8 sps:$4 sm:$0xff]   ;;  %v287_v5 = vshrl.u32 %v286_v4, 7  ;;  %s2048_s15 = scalar_lea.vmem %s2098_s5, %s1352_s19 }
  0x10   : > { %562 = vmatprep.subr.bf16.mxu0 %v1446_v6  ;;  %v1487_v13 = vld [vmem:[%s1701_s24 + $0x4] ss:$8 sps:$4 sm:$0xff]   ;;  %v1520_v30 = vld [vmem:[%s2096_s3 + $0x10] sm:$0xff]   ;;  %v1521_v31 = vld [vmem:[%s2096_s3 + $0x58] sm:$0xff]  }
  0x11   : > { %588 = vmatprep.mubr.bf16.mxu0 %v1487_v13  ;;  %v1473_v32 = vld [vmem:[%s2094_s1 + $0xc4] ss:$8 sps:$4 sm:$0xff]   ;;  %v1475_v33 = vld [vmem:[%s2094_s1 + $0xc0] ss:$8 sps:$4 sm:$0xff]   ;;  %v1522_v35 = vld [vmem:[%s2096_s3 + $0x18] sm:$0xff]   ;;  %v288_v6 = vsub.s32 0, %v287_v5 }
  0x12   : > { %1356 = vmatpush3.bf16.msra.mxu1 %v1518_v26  ;;  %v1523_v36 = vld [vmem:[%s2096_s3 + $0x60] sm:$0xff]   ;;  %v1478_v38 = vld [vmem:[%s2094_s1 + $0xd0] ss:$8 sps:$4 sm:$0xff]   ;;  %v1525_v39 = vld [vmem:[%s2096_s3 + $0x68] sm:$0xff]  }
  0x13   : > { %563 = vmatpush1.bf16.msra.mxu0 %v1448_v7  ;;  %1357 = vmatprep.subr.bf16.mxu1 %v1519_v27  ;;  %v1524_v37 = vld [vmem:[%s2096_s3 + $0x20] sm:$0xff]   ;;  %v1526_v41 = vld [vmem:[%s2096_s3 + $0x28] sm:$0xff]   ;;  %v1482_v43 = vld [vmem:[%s2094_s1 + $0xf4] ss:$8 sps:$4 sm:$0xff]  }
  0x14   : > { %564 = vmatprep.subr.bf16.mxu0 %v1449_v8  ;;  %v1479_v40 = vld [vmem:[%s2094_s1 + $0xe4] ss:$8 sps:$4 sm:$0xff]   ;;  %v1481_v42 = vld [vmem:[%s2094_s1 + $0xe0] ss:$8 sps:$4 sm:$0xff]   ;;  %v1484_v44 = vld [vmem:[%s2094_s1 + $0xf0] ss:$8 sps:$4 sm:$0xff]  }
  0x15   : > { %v1485_v45 = vld [vmem:[%s1701_s24] ss:$8 sps:$4 sm:$0xff]   ;;  %v1488_v46 = vld [vmem:[%s1701_s24 + $0x14] ss:$8 sps:$4 sm:$0xff]   ;;  %v1490_v47 = vld [vmem:[%s1701_s24 + $0x10] ss:$8 sps:$4 sm:$0xff]  }
  0x16   : > { %1358 = vmatpush3.bf16.msra.mxu1 %v1520_v30  ;;  %v1491_v48 = vld [vmem:[%s1701_s24 + $0x24] ss:$8 sps:$4 sm:$0xff]   ;;  %v1493_v49 = vld [vmem:[%s1701_s24 + $0x20] ss:$8 sps:$4 sm:$0xff]   ;;  %v1494_v50 = vld [vmem:[%s1701_s24 + $0x34] ss:$8 sps:$4 sm:$0xff]  }
  0x17   : > { %565 = vmatpush1.bf16.msra.mxu0 %v1451_v9  ;;  %1359 = vmatprep.subr.bf16.mxu1 %v1521_v31  ;;  %v1496_v51 = vld [vmem:[%s1701_s24 + $0x30] ss:$8 sps:$4 sm:$0xff]   ;;  %v1497_v52 = vld [vmem:[%s1701_s24 + $0x44] ss:$8 sps:$4 sm:$0xff]   ;;  %v1499_v53 = vld [vmem:[%s1701_s24 + $0x40] ss:$8 sps:$4 sm:$0xff]  }
  0x18   : > { %566 = vmatprep.subr.bf16.mxu0 %v1452_v10  ;;  %v1500_v54 = vld [vmem:[%s1701_s24 + $0x54] ss:$8 sps:$4 sm:$0xff]   ;;  %v1502_v55 = vld [vmem:[%s1701_s24 + $0x50] ss:$8 sps:$4 sm:$0xff]   ;;  %v1503_v56 = vld [vmem:[%s1701_s24 + $0x64] ss:$8 sps:$4 sm:$0xff]  }
  0x19   : > { %v1505_v57 = vld [vmem:[%s1701_s24 + $0x60] ss:$8 sps:$4 sm:$0xff]   ;;  %v1506_v58 = vld [vmem:[%s1701_s24 + $0x74] ss:$8 sps:$4 sm:$0xff]   ;;  %v1508_v59 = vld [vmem:[%s1701_s24 + $0x70] ss:$8 sps:$4 sm:$0xff]  }
  0x1a   : > { %1360 = vmatpush3.bf16.msra.mxu1 %v1522_v35  ;;  %v1509_v60 = vld [vmem:[%s1701_s24 + $0x84] ss:$8 sps:$4 sm:$0xff]   ;;  %v1511_v61 = vld [vmem:[%s1701_s24 + $0x80] ss:$8 sps:$4 sm:$0xff]   ;;  %v1512_v62 = vld [vmem:[%s1701_s24 + $0x94] ss:$8 sps:$4 sm:$0xff]  }
  0x1b   : > { %567 = vmatpush1.bf16.msra.mxu0 %v1454_v11  ;;  %1361 = vmatprep.subr.bf16.mxu1 %v1523_v36  ;;  %v1514_v63 = vld [vmem:[%s1701_s24 + $0x90] ss:$8 sps:$4 sm:$0xff]   ;;  %v284_v7 = vld [vmem:[%s2095_s2] sm:$0x3]  ;;  %v292_v8 = vsub.s32 1, %v287_v5 }
  0x1c   : > { %568 = vmatprep.subr.bf16.mxu0 %v1455_v12  ;;  %v1527_v0 = vld [vmem:[%s2096_s3 + $0x70] sm:$0xff]   ;;  %v1529_v2 = vld [vmem:[%s2096_s3 + $0x78] sm:$0xff]   ;;  %v1834_v9 = vrot.slane %v284_v7, %v288_v6 }
  0x1d   : > { %v1528_v1 = vld [vmem:[%s2096_s3 + $0x30] sm:$0xff]   ;;  %v1530_v3 = vld [vmem:[%s2096_s3 + $0x38] sm:$0xff]   ;;  %v1836_v11 = vrot.slane %v284_v7, %v292_v8 }
  0x1e   : > { %1362 = vmatpush3.bf16.msra.mxu1 %v1524_v37 }
  0x1f   : > { %569 = vmatpush1.bf16.msra.mxu0 %v1457_v14  ;;  %1363 = vmatprep.subr.bf16.mxu1 %v1525_v39 }
  0x20   : > { %570 = vmatprep.subr.bf16.mxu0 %v1458_v15 }
  0x22   : > { %1364 = vmatpush3.bf16.msra.mxu1 %v1526_v41 }
  0x23   : > { %571 = vmatpush1.bf16.msra.mxu0 %v1460_v16  ;;  %1365 = vmatprep.subr.bf16.mxu1 %v1527_v0 }
  0x24   : > { %572 = vmatprep.subr.bf16.mxu0 %v1461_v17 }
  0x26   : > { %1366 = vmatpush3.bf16.msra.mxu1 %v1528_v1 }
  0x27   : > { %573 = vmatpush1.bf16.msra.mxu0 %v1463_v18  ;;  %1367 = vmatprep.subr.bf16.mxu1 %v1529_v2 }
  0x28   : > { %574 = vmatprep.subr.bf16.mxu0 %v1464_v19 }
  0x2a   : > { %1368 = vmatpush3.bf16.msra.mxu1 %v1530_v3 }
  0x2b   : > { %575 = vmatpush1.bf16.msra.mxu0 %v1466_v20 }
  0x2c   : > { %576 = vmatprep.subr.bf16.mxu0 %v1467_v21 }
  0x2f   : > { %577 = vmatpush1.bf16.msra.mxu0 %v1469_v24 }
  0x30   : > { %578 = vmatprep.subr.bf16.mxu0 %v1470_v28 }
  0x33   : > { %579 = vmatpush1.bf16.msra.mxu0 %v1472_v29 }
  0x34   : > { %580 = vmatprep.subr.bf16.mxu0 %v1473_v32 }
  0x37   : > { %581 = vmatpush1.bf16.msra.mxu0 %v1475_v33 }
  0x38   : > { %582 = vmatprep.subr.bf16.mxu0 %v1476_v34 }
  0x3b   : > { %583 = vmatpush1.bf16.msra.mxu0 %v1478_v38 }
  0x3c   : > { %584 = vmatprep.subr.bf16.mxu0 %v1479_v40 }
  0x3f   : > { %585 = vmatpush1.bf16.msra.mxu0 %v1481_v42 }
  0x40   : > { %586 = vmatprep.subr.bf16.mxu0 %v1482_v43 }
  0x43   : > { %587 = vmatpush1.bf16.msra.mxu0 %v1484_v44 }
  0x46   : > { %589 = vmatmul.mubr.bf16.vlgmr.msra.gmra.mrb[0].mxu0 %v1485_v45 }
  0x47   : > { %598 = vmatprep.mubr.bf16.mxu0 %v1488_v46 }
  0x4e   : > { %599 = vmatmul.mubr.bf16.gmra.mrb[4].mxu0 %v1490_v47 }
  0x4f   : > { %608 = vmatprep.mubr.bf16.mxu0 %v1491_v48 }
  0x56   : > { %609 = vmatmul.mubr.bf16.gmra.mrb[8].mxu0 %v1493_v49 }
  0x57   : > { %618 = vmatprep.mubr.bf16.mxu0 %v1494_v50 }
  0x5e   : > { %619 = vmatmul.mubr.bf16.gmra.mrb[12].mxu0 %v1496_v51 }
  0x5f   : > { %628 = vmatprep.mubr.bf16.mxu0 %v1497_v52 }
  0x66   : > { %629 = vmatmul.mubr.bf16.gmra.mrb[16].mxu0 %v1499_v53 }
  0x67   : > { %638 = vmatprep.mubr.bf16.mxu0 %v1500_v54 }
  0x6e   : > { %639 = vmatmul.mubr.bf16.gmra.mrb[20].mxu0 %v1502_v55 }
  0x6f   : > { %648 = vmatprep.mubr.bf16.mxu0 %v1503_v56 }
  0x76   : > { %649 = vmatmul.mubr.bf16.gmra.mrb[24].mxu0 %v1505_v57 }
  0x77   : > { %658 = vmatprep.mubr.bf16.mxu0 %v1506_v58 }
  0x7e   : > { %659 = vmatmul.mubr.bf16.gmra.mrb[28].mxu0 %v1508_v59 }
  0x7f   : > { %668 = vmatprep.mubr.bf16.mxu0 %v1509_v60 }
  0x86   : > { %669 = vmatmul.mubr.bf16.gmra.mrb[32].mxu0 %v1511_v61 }
  0x87   : > { %678 = vmatprep.mubr.bf16.mxu0 %v1512_v62 }
  0x8e   : > { %679 = vmatmul.mubr.bf16.gmra.mrb[36].mxu0 %v1514_v63 }
 0x119   : > { %v590_v10 = vpop.f32.mrb[0].mxu0 }
 0x11a   : > { %v592_v12 = vpop.f32.mrb[1].mxu0  ;;  %v591_v14 = vadd.f32 %v590_v10, %v1834_v9 }
 0x11b   : > { %v594_v13 = vpop.f32.mrb[2].mxu0  ;;  %v593_v17 = vadd.f32 %v592_v12, %v1836_v11 }
 0x11c   : > { %v595_v15 = vadd.f32 %v594_v13, %v1834_v9  ;;  %v596_v16 = vpop.f32.mrb[3].mxu0 }
 0x11d   : > { %v597_v18 = vadd.f32 %v596_v16, %v1836_v11 }
 0x11e   : > { %v689_v19 = vpack.c.bf16 %v595_v15, %v591_v14 }
 0x11f   : > { %v690_v20 = vpack.c.bf16 %v597_v18, %v593_v17 }
 0x121   : > { %v600_v21 = vpop.f32.mrb[4].mxu0  ;;  %876 = vmatprep.mubr.bf16.mxu1 %v690_v20 }
 0x122   : > { %v602_v22 = vpop.f32.mrb[5].mxu0  ;;  %877 = vmatmul.mubr.bf16.vlgmr.msra.gmra.mrb[0].mxu1 %v689_v19  ;;  %v601_v24 = vadd.f32 %v600_v21, %v1834_v9 }
 0x123   : > { %v604_v23 = vpop.f32.mrb[6].mxu0  ;;  %v603_v27 = vadd.f32 %v602_v22, %v1836_v11 }
 0x124   : > { %v605_v25 = vadd.f32 %v604_v23, %v1834_v9  ;;  %v606_v26 = vpop.f32.mrb[7].mxu0 }
 0x125   : > { %v607_v28 = vadd.f32 %v606_v26, %v1836_v11 }
 0x126   : > { %v691_v29 = vpack.c.bf16 %v605_v25, %v601_v24 }
 0x127   : > { %v692_v30 = vpack.c.bf16 %v607_v28, %v603_v27 }
 0x129   : > { %v610_v31 = vpop.f32.mrb[8].mxu0  ;;  %884 = vmatprep.mubr.bf16.mxu1 %v692_v30 }
 0x12a   : > { %v612_v32 = vpop.f32.mrb[9].mxu0  ;;  %885 = vmatmul.mubr.bf16.gmra.mrb[4].mxu1 %v691_v29  ;;  %v611_v34 = vadd.f32 %v610_v31, %v1834_v9 }
 0x12b   : > { %v614_v33 = vpop.f32.mrb[10].mxu0  ;;  %v613_v37 = vadd.f32 %v612_v32, %v1836_v11 }
 0x12c   : > { %v615_v35 = vadd.f32 %v614_v33, %v1834_v9  ;;  %v616_v36 = vpop.f32.mrb[11].mxu0 }
 0x12d   : > { %v617_v38 = vadd.f32 %v616_v36, %v1836_v11 }
 0x12e   : > { %v693_v39 = vpack.c.bf16 %v615_v35, %v611_v34 }
 0x12f   : > { %v694_v40 = vpack.c.bf16 %v617_v38, %v613_v37 }
 0x131   : > { %v620_v41 = vpop.f32.mrb[12].mxu0  ;;  %892 = vmatprep.mubr.bf16.mxu1 %v694_v40 }
 0x132   : > { %v622_v42 = vpop.f32.mrb[13].mxu0  ;;  %893 = vmatmul.mubr.bf16.gmra.mrb[8].mxu1 %v693_v39  ;;  %v621_v44 = vadd.f32 %v620_v41, %v1834_v9 }
 0x133   : > { %v624_v43 = vpop.f32.mrb[14].mxu0  ;;  %v623_v47 = vadd.f32 %v622_v42, %v1836_v11 }
 0x134   : > { %v625_v45 = vadd.f32 %v624_v43, %v1834_v9  ;;  %v626_v46 = vpop.f32.mrb[15].mxu0 }
 0x135   : > { %v627_v48 = vadd.f32 %v626_v46, %v1836_v11 }
 0x136   : > { %v695_v49 = vpack.c.bf16 %v625_v45, %v621_v44 }
 0x137   : > { %v696_v50 = vpack.c.bf16 %v627_v48, %v623_v47 }
 0x139   : > { %v630_v51 = vpop.f32.mrb[16].mxu0  ;;  %900 = vmatprep.mubr.bf16.mxu1 %v696_v50 }
 0x13a   : > { %v632_v52 = vpop.f32.mrb[17].mxu0  ;;  %901 = vmatmul.mubr.bf16.gmra.mrb[12].mxu1 %v695_v49  ;;  %v631_v54 = vadd.f32 %v630_v51, %v1834_v9  ;;  %v1881_v51 = vld [vmem:[%s2097_s4] ss:$0 sm:$0xff] }
 0x13b   : > { %v634_v53 = vpop.f32.mrb[18].mxu0  ;;  %v633_v57 = vadd.f32 %v632_v52, %v1836_v11 }
 0x13c   : > { %v635_v55 = vadd.f32 %v634_v53, %v1834_v9  ;;  %v636_v56 = vpop.f32.mrb[19].mxu0 }
 0x13d   : > { %v637_v58 = vadd.f32 %v636_v56, %v1836_v11 }
 0x13e   : > { %v697_v59 = vpack.c.bf16 %v635_v55, %v631_v54 }
 0x13f   : > { %v698_v60 = vpack.c.bf16 %v637_v58, %v633_v57 }
 0x141   : > { %v640_v61 = vpop.f32.mrb[20].mxu0  ;;  %908 = vmatprep.mubr.bf16.mxu1 %v698_v60 }
 0x142   : > { %v642_v62 = vpop.f32.mrb[21].mxu0  ;;  %909 = vmatmul.mubr.bf16.gmra.mrb[16].mxu1 %v697_v59  ;;  %v641_v0 = vadd.f32 %v640_v61, %v1834_v9 }
 0x143   : > { %v644_v63 = vpop.f32.mrb[22].mxu0  ;;  %v643_v3 = vadd.f32 %v642_v62, %v1836_v11 }
 0x144   : > { %v645_v1 = vadd.f32 %v644_v63, %v1834_v9  ;;  %v646_v2 = vpop.f32.mrb[23].mxu0 }
 0x145   : > { %v647_v4 = vadd.f32 %v646_v2, %v1836_v11 }
 0x146   : > { %v699_v5 = vpack.c.bf16 %v645_v1, %v641_v0 }
 0x147   : > { %v700_v6 = vpack.c.bf16 %v647_v4, %v643_v3 }
 0x149   : > { %v650_v7 = vpop.f32.mrb[24].mxu0  ;;  %916 = vmatprep.mubr.bf16.mxu1 %v700_v6 }
 0x14a   : > { %v652_v8 = vpop.f32.mrb[25].mxu0  ;;  %917 = vmatmul.mubr.bf16.gmra.mrb[20].mxu1 %v699_v5  ;;  %v651_v12 = vadd.f32 %v650_v7, %v1834_v9 }
 0x14b   : > { %v654_v10 = vpop.f32.mrb[26].mxu0  ;;  %v653_v15 = vadd.f32 %v652_v8, %v1836_v11 }
 0x14c   : > { %v655_v13 = vadd.f32 %v654_v10, %v1834_v9  ;;  %v656_v14 = vpop.f32.mrb[27].mxu0 }
 0x14d   : > { %v657_v16 = vadd.f32 %v656_v14, %v1836_v11 }
 0x14e   : > { %v701_v17 = vpack.c.bf16 %v655_v13, %v651_v12 }
 0x14f   : > { %v702_v18 = vpack.c.bf16 %v657_v16, %v653_v15 }
 0x151   : > { %v660_v19 = vpop.f32.mrb[28].mxu0  ;;  %924 = vmatprep.mubr.bf16.mxu1 %v702_v18 }
 0x152   : > { %v662_v20 = vpop.f32.mrb[29].mxu0  ;;  %925 = vmatmul.mubr.bf16.gmra.mrb[24].mxu1 %v701_v17  ;;  %v661_v22 = vadd.f32 %v660_v19, %v1834_v9 }
 0x153   : > { %v664_v21 = vpop.f32.mrb[30].mxu0  ;;  %v663_v25 = vadd.f32 %v662_v20, %v1836_v11 }
 0x154   : > { %v665_v23 = vadd.f32 %v664_v21, %v1834_v9  ;;  %v666_v24 = vpop.f32.mrb[31].mxu0 }
 0x155   : > { %v667_v26 = vadd.f32 %v666_v24, %v1836_v11 }
 0x156   : > { %v703_v27 = vpack.c.bf16 %v665_v23, %v661_v22 }
 0x157   : > { %v704_v28 = vpack.c.bf16 %v667_v26, %v663_v25 }
 0x159   : > { %v670_v29 = vpop.f32.mrb[32].mxu0  ;;  %932 = vmatprep.mubr.bf16.mxu1 %v704_v28 }
 0x15a   : > { %v672_v30 = vpop.f32.mrb[33].mxu0  ;;  %933 = vmatmul.mubr.bf16.gmra.mrb[28].mxu1 %v703_v27  ;;  %v671_v32 = vadd.f32 %v670_v29, %v1834_v9 }
 0x15b   : > { %v674_v31 = vpop.f32.mrb[34].mxu0  ;;  %v673_v35 = vadd.f32 %v672_v30, %v1836_v11 }
 0x15c   : > { %v675_v33 = vadd.f32 %v674_v31, %v1834_v9  ;;  %v676_v34 = vpop.f32.mrb[35].mxu0 }
 0x15d   : > { %v677_v36 = vadd.f32 %v676_v34, %v1836_v11 }
 0x15e   : > { %v705_v37 = vpack.c.bf16 %v675_v33, %v671_v32 }
 0x15f   : > { %v706_v38 = vpack.c.bf16 %v677_v36, %v673_v35 }
 0x161   : > { %v680_v39 = vpop.f32.mrb[36].mxu0  ;;  %940 = vmatprep.mubr.bf16.mxu1 %v706_v38 }
 0x162   : > { %v682_v40 = vpop.f32.mrb[37].mxu0  ;;  %941 = vmatmul.mubr.bf16.gmra.mrb[32].mxu1 %v705_v37  ;;  %v681_v42 = vadd.f32 %v680_v39, %v1834_v9 }
 0x163   : > { %v684_v41 = vpop.f32.mrb[38].mxu0  ;;  %v683_v45 = vadd.f32 %v682_v40, %v1836_v11 }
 0x164   : > { %v685_v43 = vadd.f32 %v684_v41, %v1834_v9  ;;  %v686_v44 = vpop.f32.mrb[39].mxu0 }
 0x165   : > { %v687_v46 = vadd.f32 %v686_v44, %v1836_v11 }
 0x166   : > { %v707_v47 = vpack.c.bf16 %v685_v43, %v681_v42 }
 0x167   : > { %v708_v48 = vpack.c.bf16 %v687_v46, %v683_v45 }
 0x169   : > { %948 = vmatprep.mubr.bf16.mxu1 %v708_v48 }
 0x16a   : > { %949 = vmatmul.mubr.bf16.gmra.mrb[36].mxu1 %v707_v47 }
 0x1f5   : > { %v1369_v49 = vpop.f32.mrb[0].mxu1 }
 0x1f6   : > { %v1370_v50 = vpop.f32.mrb[1].mxu1 }
 0x1f7   : > { %v1371_v52 = vadd.f32 %v1370_v50, %v1369_v49  ;;  %v1372_v53 = vpop.f32.mrb[2].mxu1 }
 0x1f8   : > { %v1373_v54 = vpop.f32.mrb[3].mxu1 }
 0x1f9   : > { %v1374_v9 = vadd.f32 %v1373_v54, %v1372_v53  ;;  %v1884_v55 = vadd.f32 %v1371_v52, %v1881_v51 }
 0x1fb   : > { %957 = vmax.xlane.f32.xlu0 %v1884_v55  ;;  %v1888_v56 = vadd.f32 %v1374_v9, %v1881_v51 }
 0x1fd   : > { %v1375_v11 = vpop.f32.mrb[4].mxu1 }
 0x1fe   : > { %v1376_v57 = vpop.f32.mrb[5].mxu1 }
 0x1ff   : > { %v1377_v58 = vadd.f32 %v1376_v57, %v1375_v11  ;;  %v1378_v59 = vpop.f32.mrb[6].mxu1  ;;  %959 = vmax.xlane.f32.xlu0 %v1888_v56 }
 0x200   : > { %v1379_v60 = vpop.f32.mrb[7].mxu1 }
 0x201   : > { %v1380_v61 = vadd.f32 %v1379_v60, %v1378_v59  ;;  %v1892_v62 = vadd.f32 %v1377_v58, %v1881_v51 }
 0x203   : > { %961 = vmax.xlane.f32.xlu1 %v1892_v62  ;;  %v1896_v0 = vadd.f32 %v1380_v61, %v1881_v51 }
 0x205   : > { %v1381_v63 = vpop.f32.mrb[8].mxu1 }
 0x206   : > { %v1382_v1 = vpop.f32.mrb[9].mxu1 }
 0x207   : > { %v1383_v2 = vadd.f32 %v1382_v1, %v1381_v63  ;;  %v1384_v3 = vpop.f32.mrb[10].mxu1  ;;  %963 = vmax.xlane.f32.xlu1 %v1896_v0 }
 0x208   : > { %v1385_v4 = vpop.f32.mrb[11].mxu1 }
 0x209   : > { %v1386_v5 = vadd.f32 %v1385_v4, %v1384_v3  ;;  %v1900_v6 = vadd.f32 %v1383_v2, %v1881_v51 }
 0x20b   : > { %965 = vmax.xlane.f32.xlu0 %v1900_v6  ;;  %v1904_v7 = vadd.f32 %v1386_v5, %v1881_v51 }
 0x20d   : > { %v1387_v8 = vpop.f32.mrb[12].mxu1  ;;  %967 = vmax.xlane.f32.xlu1 %v1904_v7 }
 0x20e   : > { %v1388_v10 = vpop.f32.mrb[13].mxu1 }
 0x20f   : > { %v1389_v12 = vadd.f32 %v1388_v10, %v1387_v8  ;;  %v1390_v13 = vpop.f32.mrb[14].mxu1 }
 0x210   : > { %v1391_v14 = vpop.f32.mrb[15].mxu1 }
 0x211   : > { %v1392_v15 = vadd.f32 %v1391_v14, %v1390_v13  ;;  %v1908_v16 = vadd.f32 %v1389_v12, %v1881_v51 }
 0x213   : > { %969 = vmax.xlane.f32.xlu0 %v1908_v16  ;;  %v1912_v17 = vadd.f32 %v1392_v15, %v1881_v51 }
 0x215   : > { %v1393_v18 = vpop.f32.mrb[16].mxu1  ;;  %971 = vmax.xlane.f32.xlu1 %v1912_v17 }
 0x216   : > { %v1394_v19 = vpop.f32.mrb[17].mxu1 }
 0x217   : > { %v1395_v20 = vadd.f32 %v1394_v19, %v1393_v18  ;;  %v1396_v21 = vpop.f32.mrb[18].mxu1 }
 0x218   : > { %v1397_v22 = vpop.f32.mrb[19].mxu1 }
 0x219   : > { %v1398_v23 = vadd.f32 %v1397_v22, %v1396_v21  ;;  %v1916_v24 = vadd.f32 %v1395_v20, %v1881_v51 }
 0x21b   : > { %973 = vmax.xlane.f32.xlu0 %v1916_v24  ;;  %v1920_v25 = vadd.f32 %v1398_v23, %v1881_v51 }
 0x21d   : > { %v1399_v26 = vpop.f32.mrb[20].mxu1  ;;  %975 = vmax.xlane.f32.xlu1 %v1920_v25 }
 0x21e   : > { %v1400_v27 = vpop.f32.mrb[21].mxu1 }
 0x21f   : > { %v1401_v28 = vadd.f32 %v1400_v27, %v1399_v26  ;;  %v1402_v29 = vpop.f32.mrb[22].mxu1 }
 0x220   : > { %v1403_v30 = vpop.f32.mrb[23].mxu1 }
 0x221   : > { %v1404_v31 = vadd.f32 %v1403_v30, %v1402_v29  ;;  %v1924_v32 = vadd.f32 %v1401_v28, %v1881_v51 }
 0x223   : > { %977 = vmax.xlane.f32.xlu0 %v1924_v32  ;;  %v1928_v33 = vadd.f32 %v1404_v31, %v1881_v51 }
 0x225   : > { %v1405_v34 = vpop.f32.mrb[24].mxu1  ;;  %979 = vmax.xlane.f32.xlu1 %v1928_v33 }
 0x226   : > { %v1406_v35 = vpop.f32.mrb[25].mxu1 }
 0x227   : > { %v1407_v36 = vadd.f32 %v1406_v35, %v1405_v34  ;;  %v1408_v37 = vpop.f32.mrb[26].mxu1 }
 0x228   : > { %v1409_v38 = vpop.f32.mrb[27].mxu1 }
 0x229   : > { %v1410_v39 = vadd.f32 %v1409_v38, %v1408_v37  ;;  %v1932_v40 = vadd.f32 %v1407_v36, %v1881_v51 }
 0x22b   : > { %981 = vmax.xlane.f32.xlu0 %v1932_v40  ;;  %v1936_v41 = vadd.f32 %v1410_v39, %v1881_v51 }
 0x22d   : > { %v1411_v42 = vpop.f32.mrb[28].mxu1  ;;  %983 = vmax.xlane.f32.xlu1 %v1936_v41 }
 0x22e   : > { %v1412_v43 = vpop.f32.mrb[29].mxu1 }
 0x22f   : > { %v1413_v44 = vadd.f32 %v1412_v43, %v1411_v42  ;;  %v1414_v45 = vpop.f32.mrb[30].mxu1 }
 0x230   : > { %v1415_v46 = vpop.f32.mrb[31].mxu1 }
 0x231   : > { %v1416_v47 = vadd.f32 %v1415_v46, %v1414_v45  ;;  %v1940_v48 = vadd.f32 %v1413_v44, %v1881_v51 }
 0x233   : > { %985 = vmax.xlane.f32.xlu0 %v1940_v48  ;;  %v1944_v49 = vadd.f32 %v1416_v47, %v1881_v51 }
 0x235   : > { %v1417_v50 = vpop.f32.mrb[32].mxu1  ;;  %987 = vmax.xlane.f32.xlu1 %v1944_v49 }
 0x236   : > { %v1418_v52 = vpop.f32.mrb[33].mxu1 }
 0x237   : > { %v1419_v53 = vadd.f32 %v1418_v52, %v1417_v50  ;;  %v1420_v54 = vpop.f32.mrb[34].mxu1 }
 0x238   : > { %v1421_v9 = vpop.f32.mrb[35].mxu1 }
 0x239   : > { %v1422_v11 = vadd.f32 %v1421_v9, %v1420_v54  ;;  %v1948_v57 = vadd.f32 %v1419_v53, %v1881_v51 }
 0x23b   : > { %989 = vmax.xlane.f32.xlu0 %v1948_v57  ;;  %v1952_v58 = vadd.f32 %v1422_v11, %v1881_v51 }
 0x23d   : > { %v1423_v59 = vpop.f32.mrb[36].mxu1  ;;  %991 = vmax.xlane.f32.xlu1 %v1952_v58 }
 0x23e   : > { %v1424_v60 = vpop.f32.mrb[37].mxu1 }
 0x23f   : > { %v1425_v61 = vadd.f32 %v1424_v60, %v1423_v59  ;;  %v1426_v63 = vpop.f32.mrb[38].mxu1 }
 0x240   : > { %v1427_v1 = vpop.f32.mrb[39].mxu1 }
 0x241   : > { %v1428_v2 = vadd.f32 %v1427_v1, %v1426_v63  ;;  %v1956_v3 = vadd.f32 %v1425_v61, %v1881_v51 }
 0x243   : > { %993 = vmax.xlane.f32.xlu0 %v1956_v3  ;;  %v1960_v4 = vadd.f32 %v1428_v2, %v1881_v51 }
 0x245   : > { %995 = vmax.xlane.f32.xlu1 %v1960_v4 }
 0x288   : > { %v958_v5 = vpop.xlane.xlu0 %957 }
 0x289   : > { %v997_v8 = vsub.f32 %v1884_v55, %v958_v5 }
 0x28b   : > { %v1017_v10 = vmul.f32 1.442695, %v997_v8 }
 0x28c   : > { %v960_v12 = vpop.xlane.xlu0 %959 }
 0x28d   : > { %1531 = vpow2.f32 %v1017_v10  ;;  %v998_v13 = vsub.f32 %v1888_v56, %v960_v12 }
 0x28f   : > { %v1019_v14 = vmul.f32 1.442695, %v998_v13 }
 0x290   : > { %v962_v15 = vpop.xlane.xlu1 %961 }
 0x291   : > { %1533 = vpow2.f32 %v1019_v14  ;;  %v999_v18 = vsub.f32 %v1892_v62, %v962_v15 }
 0x293   : > { %v1021_v19 = vmul.f32 1.442695, %v999_v18 }
 0x294   : > { %v964_v20 = vpop.xlane.xlu1 %963 }
 0x295   : > { %1535 = vpow2.f32 %v1021_v19  ;;  %v1000_v51 = vsub.f32 %v1896_v0, %v964_v20 }
 0x297   : > { %v1967_v21 = vpop.eup %1531  ;;  %v1023_v22 = vmul.f32 1.442695, %v1000_v51 }
 0x298   : > { %1057 = vadd.xlane.f32.xlu0 %v1967_v21  ;;  %v966_v55 = vpop.xlane.xlu0 %965 }
 0x299   : > { %1537 = vpow2.f32 %v1023_v22  ;;  %v1001_v23 = vsub.f32 %v1900_v6, %v966_v55 }
 0x29a   : > { %v968_v56 = vpop.xlane.xlu1 %967 }
 0x29b   : > { %v1971_v26 = vpop.eup %1533  ;;  %v1025_v27 = vmul.f32 1.442695, %v1001_v23  ;;  %v1002_v62 = vsub.f32 %v1904_v7, %v968_v56 }
 0x29c   : > { %1059 = vadd.xlane.f32.xlu1 %v1971_v26 }
 0x29d   : > { %1539 = vpow2.f32 %v1025_v27  ;;  %v1027_v28 = vmul.f32 1.442695, %v1002_v62 }
 0x29f   : > { %v1975_v0 = vpop.eup %1535  ;;  %1541 = vpow2.f32 %v1027_v28 }
 0x2a0   : > { %1061 = vadd.xlane.f32.xlu0 %v1975_v0  ;;  %v970_v29 = vpop.xlane.xlu0 %969 }
 0x2a1   : > { %v1003_v30 = vsub.f32 %v1908_v16, %v970_v29 }
 0x2a2   : > { %v972_v31 = vpop.xlane.xlu1 %971 }
 0x2a3   : > { %v1979_v6 = vpop.eup %1537  ;;  %v1029_v34 = vmul.f32 1.442695, %v1003_v30  ;;  %v1004_v35 = vsub.f32 %v1912_v17, %v972_v31 }
 0x2a4   : > { %1063 = vadd.xlane.f32.xlu1 %v1979_v6 }
 0x2a5   : > { %1543 = vpow2.f32 %v1029_v34  ;;  %v1031_v7 = vmul.f32 1.442695, %v1004_v35 }
 0x2a7   : > { %v1983_v36 = vpop.eup %1539  ;;  %1545 = vpow2.f32 %v1031_v7 }
 0x2a8   : > { %1065 = vadd.xlane.f32.xlu0 %v1983_v36  ;;  %v974_v37 = vpop.xlane.xlu0 %973 }
 0x2a9   : > { %v1986_v38 = vpop.eup %1541  ;;  %v1005_v16 = vsub.f32 %v1916_v24, %v974_v37 }
 0x2aa   : > { %v976_v39 = vpop.xlane.xlu1 %975  ;;  %1067 = vadd.xlane.f32.xlu1 %v1986_v38 }
 0x2ab   : > { %v1033_v42 = vmul.f32 1.442695, %v1005_v16  ;;  %v1006_v17 = vsub.f32 %v1920_v25, %v976_v39 }
 0x2ad   : > { %1547 = vpow2.f32 %v1033_v42  ;;  %v1035_v43 = vmul.f32 1.442695, %v1006_v17 }
 0x2af   : > { %v1991_v44 = vpop.eup %1543  ;;  %1549 = vpow2.f32 %v1035_v43 }
 0x2b0   : > { %1069 = vadd.xlane.f32.xlu0 %v1991_v44  ;;  %v978_v45 = vpop.xlane.xlu0 %977 }
 0x2b1   : > { %v1994_v46 = vpop.eup %1545  ;;  %v1007_v47 = vsub.f32 %v1924_v32, %v978_v45 }
 0x2b2   : > { %v980_v50 = vpop.xlane.xlu1 %979  ;;  %1071 = vadd.xlane.f32.xlu1 %v1994_v46 }
 0x2b3   : > { %v1037_v24 = vmul.f32 1.442695, %v1007_v47  ;;  %v1008_v52 = vsub.f32 %v1928_v33, %v980_v50 }
 0x2b5   : > { %1551 = vpow2.f32 %v1037_v24  ;;  %v1039_v25 = vmul.f32 1.442695, %v1008_v52 }
 0x2b7   : > { %v1999_v53 = vpop.eup %1547  ;;  %1553 = vpow2.f32 %v1039_v25 }
 0x2b8   : > { %1073 = vadd.xlane.f32.xlu0 %v1999_v53  ;;  %v982_v54 = vpop.xlane.xlu0 %981 }
 0x2b9   : > { %v2002_v9 = vpop.eup %1549  ;;  %v1009_v11 = vsub.f32 %v1932_v40, %v982_v54 }
 0x2ba   : > { %v984_v59 = vpop.xlane.xlu1 %983  ;;  %1075 = vadd.xlane.f32.xlu1 %v2002_v9 }
 0x2bb   : > { %v1041_v32 = vmul.f32 1.442695, %v1009_v11  ;;  %v1010_v60 = vsub.f32 %v1936_v41, %v984_v59 }
 0x2bd   : > { %1555 = vpow2.f32 %v1041_v32  ;;  %v1043_v33 = vmul.f32 1.442695, %v1010_v60 }
 0x2bf   : > { %v2007_v61 = vpop.eup %1551  ;;  %1557 = vpow2.f32 %v1043_v33 }
 0x2c0   : > { %1077 = vadd.xlane.f32.xlu0 %v2007_v61  ;;  %v986_v63 = vpop.xlane.xlu0 %985 }
 0x2c1   : > { %v2010_v1 = vpop.eup %1553  ;;  %v1011_v2 = vsub.f32 %v1940_v48, %v986_v63 }
 0x2c2   : > { %v988_v5 = vpop.xlane.xlu1 %987  ;;  %1079 = vadd.xlane.f32.xlu1 %v2010_v1 }
 0x2c3   : > { %v1045_v40 = vmul.f32 1.442695, %v1011_v2  ;;  %v1012_v8 = vsub.f32 %v1944_v49, %v988_v5 }
 0x2c5   : > { %1559 = vpow2.f32 %v1045_v40  ;;  %v1047_v41 = vmul.f32 1.442695, %v1012_v8 }
 0x2c7   : > { %v2015_v10 = vpop.eup %1555  ;;  %1561 = vpow2.f32 %v1047_v41 }
 0x2c8   : > { %1081 = vadd.xlane.f32.xlu0 %v2015_v10  ;;  %v990_v12 = vpop.xlane.xlu0 %989 }
 0x2c9   : > { %v2018_v13 = vpop.eup %1557  ;;  %v1013_v14 = vsub.f32 %v1948_v57, %v990_v12 }
 0x2ca   : > { %v992_v15 = vpop.xlane.xlu1 %991  ;;  %1083 = vadd.xlane.f32.xlu1 %v2018_v13 }
 0x2cb   : > { %v1049_v48 = vmul.f32 1.442695, %v1013_v14  ;;  %v1014_v18 = vsub.f32 %v1952_v58, %v992_v15 }
 0x2cd   : > { %1563 = vpow2.f32 %v1049_v48  ;;  %v1051_v49 = vmul.f32 1.442695, %v1014_v18 }
 0x2cf   : > { %v2023_v19 = vpop.eup %1559  ;;  %1565 = vpow2.f32 %v1051_v49 }
 0x2d0   : > { %1085 = vadd.xlane.f32.xlu0 %v2023_v19  ;;  %v994_v20 = vpop.xlane.xlu0 %993 }
 0x2d1   : > { %v2026_v51 = vpop.eup %1561  ;;  %v1015_v22 = vsub.f32 %v1956_v3, %v994_v20 }
 0x2d2   : > { %v996_v55 = vpop.xlane.xlu1 %995  ;;  %1087 = vadd.xlane.f32.xlu1 %v2026_v51 }
 0x2d3   : > { %v1053_v57 = vmul.f32 1.442695, %v1015_v22  ;;  %v1016_v23 = vsub.f32 %v1960_v4, %v996_v55 }
 0x2d5   : > { %1567 = vpow2.f32 %v1053_v57  ;;  %v1055_v58 = vmul.f32 1.442695, %v1016_v23 }
 0x2d7   : > { %v2031_v56 = vpop.eup %1563  ;;  %1569 = vpow2.f32 %v1055_v58 }
 0x2d8   : > { %1089 = vadd.xlane.f32.xlu0 %v2031_v56 }
 0x2d9   : > { %v2034_v27 = vpop.eup %1565 }
 0x2da   : > { %1091 = vadd.xlane.f32.xlu1 %v2034_v27 }
 0x2df   : > { %v2037_v62 = vpop.eup %1567 }
 0x2e0   : > { %1093 = vadd.xlane.f32.xlu0 %v2037_v62 }
 0x2e1   : > { %v2040_v3 = vpop.eup %1569 }
 0x2e2   : > { %1095 = vadd.xlane.f32.xlu1 %v2040_v3 }
 0x325   : > { %v1058_v4 = vpop.xlane.xlu0 %1057 }
 0x326   : > { %1571 = vrcp.f32 %v1058_v4 }
 0x329   : > { %v1060_v28 = vpop.xlane.xlu1 %1059 }
 0x32a   : > { %1573 = vrcp.f32 %v1060_v28 }
 0x32d   : > { %v1062_v29 = vpop.xlane.xlu0 %1061 }
 0x32e   : > { %1575 = vrcp.f32 %v1062_v29 }
 0x330   : > { %v1572_v30 = vpop.eup %1571 }
 0x331   : > { %v1117_v31 = vmul.f32 %v1572_v30, %v1058_v4  ;;  %v1064_v34 = vpop.xlane.xlu1 %1063 }
 0x332   : > { %1577 = vrcp.f32 %v1064_v34 }
 0x333   : > { %v1137_v35 = vsub.f32 2.0, %v1117_v31 }
 0x334   : > { %v1574_v7 = vpop.eup %1573 }
 0x335   : > { %v1157_v37 = vmul.f32 %v1572_v30, %v1137_v35  ;;  %v1118_v16 = vmul.f32 %v1574_v7, %v1060_v28  ;;  %v1066_v39 = vpop.xlane.xlu0 %1065 }
 0x336   : > { %1579 = vrcp.f32 %v1066_v39 }
 0x337   : > { %v1177_v42 = vmul.f32 %v1967_v21, %v1157_v37  ;;  %v1138_v17 = vsub.f32 2.0, %v1118_v16  ;;  %v1068_v43 = vpop.xlane.xlu1 %1067 }
 0x338   : > { %v1576_v45 = vpop.eup %1575  ;;  %1581 = vrcp.f32 %v1068_v43 }
 0x339   : > { %1197 = vst [vmem:[%s2048_s15] sm:$0xff] %v1177_v42  ;;  %v1158_v47 = vmul.f32 %v1574_v7, %v1138_v17  ;;  %v1119_v50 = vmul.f32 %v1576_v45, %v1062_v29 }
 0x33b   : > { %v1178_v24 = vmul.f32 %v1971_v26, %v1158_v47  ;;  %v1139_v52 = vsub.f32 2.0, %v1119_v50 }
 0x33c   : > { %v1578_v25 = vpop.eup %1577 }
 0x33d   : > { %1198 = vst [vmem:[%s2048_s15 + $0x8] sm:$0xff] %v1178_v24  ;;  %v1159_v54 = vmul.f32 %v1576_v45, %v1139_v52  ;;  %v1120_v11 = vmul.f32 %v1578_v25, %v1064_v34  ;;  %v1070_v59 = vpop.xlane.xlu0 %1069 }
 0x33e   : > { %1583 = vrcp.f32 %v1070_v59 }
 0x33f   : > { %v1179_v21 = vmul.f32 %v1975_v0, %v1159_v54  ;;  %v1140_v32 = vsub.f32 2.0, %v1120_v11  ;;  %v1072_v60 = vpop.xlane.xlu1 %1071 }
 0x340   : > { %v1580_v33 = vpop.eup %1579  ;;  %1585 = vrcp.f32 %v1072_v60 }
 0x341   : > { %1199 = vst [vmem:[%s2048_s15 + $0x10] sm:$0xff] %v1179_v21  ;;  %v1160_v63 = vmul.f32 %v1578_v25, %v1140_v32  ;;  %v1121_v2 = vmul.f32 %v1580_v33, %v1066_v39 }
 0x342   : > { %v1582_v5 = vpop.eup %1581 }
 0x343   : > { %v1180_v26 = vmul.f32 %v1979_v6, %v1160_v63  ;;  %v1141_v40 = vsub.f32 2.0, %v1121_v2  ;;  %v1122_v8 = vmul.f32 %v1582_v5, %v1068_v43 }
 0x345   : > { %1200 = vst [vmem:[%s2048_s15 + $0x18] sm:$0xff] %v1180_v26  ;;  %v1161_v41 = vmul.f32 %v1580_v33, %v1141_v40  ;;  %v1142_v12 = vsub.f32 2.0, %v1122_v8  ;;  %v1074_v14 = vpop.xlane.xlu0 %1073 }
 0x346   : > { %1587 = vrcp.f32 %v1074_v14 }
 0x347   : > { %v1181_v0 = vmul.f32 %v1983_v36, %v1161_v41  ;;  %v1162_v15 = vmul.f32 %v1582_v5, %v1142_v12  ;;  %v1076_v48 = vpop.xlane.xlu1 %1075 }
 0x348   : > { %v1584_v18 = vpop.eup %1583  ;;  %1589 = vrcp.f32 %v1076_v48 }
 0x349   : > { %1201 = vst [vmem:[%s2048_s15 + $0x20] sm:$0xff] %v1181_v0  ;;  %v1182_v49 = vmul.f32 %v1986_v38, %v1162_v15  ;;  %v1123_v20 = vmul.f32 %v1584_v18, %v1070_v59 }
 0x34a   : > { %v1586_v6 = vpop.eup %1585 }
 0x34b   : > { %1202 = vst [vmem:[%s2048_s15 + $0x28] sm:$0xff] %v1182_v49  ;;  %v1143_v22 = vsub.f32 2.0, %v1123_v20  ;;  %v1124_v55 = vmul.f32 %v1586_v6, %v1072_v60 }
 0x34d   : > { %v1163_v57 = vmul.f32 %v1584_v18, %v1143_v22  ;;  %v1144_v23 = vsub.f32 2.0, %v1124_v55  ;;  %v1078_v58 = vpop.xlane.xlu0 %1077 }
 0x34e   : > { %1591 = vrcp.f32 %v1078_v58 }
 0x34f   : > { %v1183_v36 = vmul.f32 %v1991_v44, %v1163_v57  ;;  %v1164_v4 = vmul.f32 %v1586_v6, %v1144_v23  ;;  %v1080_v28 = vpop.xlane.xlu1 %1079 }
 0x350   : > { %v1588_v29 = vpop.eup %1587  ;;  %1593 = vrcp.f32 %v1080_v28 }
 0x351   : > { %1203 = vst [vmem:[%s2048_s15 + $0x30] sm:$0xff] %v1183_v36  ;;  %v1184_v38 = vmul.f32 %v1994_v46, %v1164_v4  ;;  %v1125_v30 = vmul.f32 %v1588_v29, %v1074_v14 }
 0x352   : > { %v1590_v31 = vpop.eup %1589 }
 0x353   : > { %1204 = vst [vmem:[%s2048_s15 + $0x38] sm:$0xff] %v1184_v38  ;;  %v1145_v34 = vsub.f32 2.0, %v1125_v30  ;;  %v1126_v35 = vmul.f32 %v1590_v31, %v1076_v48 }
 0x355   : > { %v1165_v7 = vmul.f32 %v1588_v29, %v1145_v34  ;;  %v1146_v37 = vsub.f32 2.0, %v1126_v35  ;;  %v1082_v16 = vpop.xlane.xlu0 %1081 }
 0x356   : > { %1595 = vrcp.f32 %v1082_v16 }
 0x357   : > { %v1185_v44 = vmul.f32 %v1999_v53, %v1165_v7  ;;  %v1166_v39 = vmul.f32 %v1590_v31, %v1146_v37  ;;  %v1084_v42 = vpop.xlane.xlu1 %1083 }
 0x358   : > { %v1592_v17 = vpop.eup %1591  ;;  %1597 = vrcp.f32 %v1084_v42 }
 0x359   : > { %1205 = vst [vmem:[%s2048_s15 + $0x40] sm:$0xff] %v1185_v44  ;;  %v1186_v46 = vmul.f32 %v2002_v9, %v1166_v39  ;;  %v1127_v43 = vmul.f32 %v1592_v17, %v1078_v58 }
 0x35a   : > { %v1594_v45 = vpop.eup %1593 }
 0x35b   : > { %1206 = vst [vmem:[%s2048_s15 + $0x48] sm:$0xff] %v1186_v46  ;;  %v1147_v47 = vsub.f32 2.0, %v1127_v43  ;;  %v1128_v50 = vmul.f32 %v1594_v45, %v1080_v28 }
 0x35d   : > { %v1167_v24 = vmul.f32 %v1592_v17, %v1147_v47  ;;  %v1148_v52 = vsub.f32 2.0, %v1128_v50  ;;  %v1086_v25 = vpop.xlane.xlu0 %1085 }
 0x35e   : > { %1599 = vrcp.f32 %v1086_v25 }
 0x35f   : > { %v1187_v53 = vmul.f32 %v2007_v61, %v1167_v24  ;;  %v1168_v54 = vmul.f32 %v1594_v45, %v1148_v52  ;;  %v1088_v11 = vpop.xlane.xlu1 %1087 }
 0x360   : > { %v1596_v59 = vpop.eup %1595  ;;  %1601 = vrcp.f32 %v1088_v11 }
 0x361   : > { %1207 = vst [vmem:[%s2048_s15 + $0x50] sm:$0xff] %v1187_v53  ;;  %v1188_v9 = vmul.f32 %v2010_v1, %v1168_v54  ;;  %v1129_v21 = vmul.f32 %v1596_v59, %v1082_v16 }
 0x362   : > { %v1598_v32 = vpop.eup %1597 }
 0x363   : > { %1208 = vst [vmem:[%s2048_s15 + $0x58] sm:$0xff] %v1188_v9  ;;  %v1149_v60 = vsub.f32 2.0, %v1129_v21  ;;  %v1130_v33 = vmul.f32 %v1598_v32, %v1084_v42 }
 0x365   : > { %v1169_v63 = vmul.f32 %v1596_v59, %v1149_v60  ;;  %v1150_v2 = vsub.f32 2.0, %v1130_v33  ;;  %v1090_v5 = vpop.xlane.xlu0 %1089 }
 0x366   : > { %1603 = vrcp.f32 %v1090_v5 }
 0x367   : > { %v1189_v61 = vmul.f32 %v2015_v10, %v1169_v63  ;;  %v1170_v26 = vmul.f32 %v1598_v32, %v1150_v2  ;;  %v1092_v40 = vpop.xlane.xlu1 %1091 }
 0x368   : > { %v1600_v8 = vpop.eup %1599  ;;  %1605 = vrcp.f32 %v1092_v40 }
 0x369   : > { %1209 = vst [vmem:[%s2048_s15 + $0x60] sm:$0xff] %v1189_v61  ;;  %v1190_v1 = vmul.f32 %v2018_v13, %v1170_v26  ;;  %v1131_v41 = vmul.f32 %v1600_v8, %v1086_v25 }
 0x36a   : > { %v1602_v12 = vpop.eup %1601 }
 0x36b   : > { %1210 = vst [vmem:[%s2048_s15 + $0x68] sm:$0xff] %v1190_v1  ;;  %v1151_v14 = vsub.f32 2.0, %v1131_v41  ;;  %v1132_v0 = vmul.f32 %v1602_v12, %v1088_v11 }
 0x36d   : > { %v1171_v15 = vmul.f32 %v1600_v8, %v1151_v14  ;;  %v1152_v48 = vsub.f32 2.0, %v1132_v0  ;;  %v1094_v18 = vpop.xlane.xlu0 %1093 }
 0x36e   : > { %1607 = vrcp.f32 %v1094_v18 }
 0x36f   : > { %v1191_v10 = vmul.f32 %v2023_v19, %v1171_v15  ;;  %v1172_v49 = vmul.f32 %v1602_v12, %v1152_v48  ;;  %v1096_v20 = vpop.xlane.xlu1 %1095 }
 0x370   : > { %v1604_v6 = vpop.eup %1603  ;;  %1609 = vrcp.f32 %v1096_v20 }
 0x371   : > { %1211 = vst [vmem:[%s2048_s15 + $0x70] sm:$0xff] %v1191_v10  ;;  %v1192_v13 = vmul.f32 %v2026_v51, %v1172_v49  ;;  %v1133_v22 = vmul.f32 %v1604_v6, %v1090_v5 }
 0x372   : > { %v1606_v55 = vpop.eup %1605 }
 0x373   : > { %1212 = vst [vmem:[%s2048_s15 + $0x78] sm:$0xff] %v1192_v13  ;;  %v1153_v57 = vsub.f32 2.0, %v1133_v22  ;;  %v1134_v23 = vmul.f32 %v1606_v55, %v1092_v40 }
 0x375   : > { %v1173_v58 = vmul.f32 %v1604_v6, %v1153_v57  ;;  %v1154_v36 = vsub.f32 2.0, %v1134_v23 }
 0x377   : > { %v1193_v4 = vmul.f32 %v2031_v56, %v1173_v58  ;;  %v1174_v19 = vmul.f32 %v1606_v55, %v1154_v36 }
 0x378   : > { %v1608_v28 = vpop.eup %1607 }
 0x379   : > { %1213 = vst [vmem:[%s2048_s15 + $0x80] sm:$0xff] %v1193_v4  ;;  %v1194_v29 = vmul.f32 %v2034_v27, %v1174_v19  ;;  %v1135_v38 = vmul.f32 %v1608_v28, %v1094_v18 }
 0x37a   : > { %v1610_v30 = vpop.eup %1609 }
 0x37b   : > { %1214 = vst [vmem:[%s2048_s15 + $0x88] sm:$0xff] %v1194_v29  ;;  %v1155_v51 = vsub.f32 2.0, %v1135_v38  ;;  %v1136_v31 = vmul.f32 %v1610_v30, %v1096_v20 }
 0x37d   : > { %v1175_v34 = vmul.f32 %v1608_v28, %v1155_v51  ;;  %v1156_v35 = vsub.f32 2.0, %v1136_v31 }
 0x37f   : > { %v1195_v7 = vmul.f32 %v2037_v62, %v1175_v34  ;;  %v1176_v37 = vmul.f32 %v1610_v30, %v1156_v35 }
 0x381   : > { %1215 = vst [vmem:[%s2048_s15 + $0x90] sm:$0xff] %v1195_v7  ;;  %v1196_v16 = vmul.f32 %v2040_v3, %v1176_v37 }
 0x383   : > { %1216 = vst [vmem:[%s2048_s15 + $0x98] sm:$0xff] %v1196_v16 }
 0x384 PF: > { %s15_s18 = sadd.s32 1, %s1617_s18  }
 0x385   : > { %p12_p4 = scmp.ge.s32.totalorder %s15_s18, 4  }
 0x387   :  { %14 = sbr.rel (!%p12_p4) target bundleno = 1 (0x1), region = 70 }

</bundles_post_ra>
